<compile_context>
chip_gen: v6e
topology: v6e:2x2x1
jax: 0.10.0
libtpu: 0.0.40
codegen_flags: <defaults>
</compile_context>

<pallas_src>
import jax
import jax.numpy as jnp
from jax.experimental import pallas as pl
from jax.experimental.pallas import tpu as pltpu

_EPS = 1e-6   # F.pairwise_distance default eps
N_ROWS = 128  # hardcoded in the reference module (torch.zeros(128, 10))
N_COLS = 10


def _pairwise_distance_kernel(yt_ref, out_ref):
    """yt_ref: (C, N) with batch on the 128-lane axis; out_ref: (1, N).

    one_hot in the reference is all-zeros (the scatter line is a bare
    annotation, i.e. a no-op), so diff = y - 0 + eps = y + eps.
    """
    c = yt_ref.shape[0]
    d = yt_ref[0:1, :].astype(jnp.float32) + _EPS
    acc = d * d
    # Unrolled VPU adds over the tiny class dimension (keeps everything
    # lane-dense, avoids a cross-lane XLU reduce).
    for r in range(1, c):
        d = yt_ref[r:r + 1, :].astype(jnp.float32) + _EPS
        acc = acc + d * d
    out_ref[...] = jnp.sqrt(acc)  # (1, N): lane-dense, unmasked store


@jax.jit
def pairwise_distance_pallas(y):
    """Per-row L2 distance ||y - 0 + eps||_2; y: (N, C) -> (N,)."""
    n, c = y.shape
    y_t = y.T  # (C, N): batch on the lane axis. Pure layout plumbing.
    out = pl.pallas_call(
        _pairwise_distance_kernel,
        out_shape=jax.ShapeDtypeStruct((1, n), jnp.float32),
        in_specs=[pl.BlockSpec(memory_space=pltpu.MemorySpace.VMEM)],
        out_specs=pl.BlockSpec(memory_space=pltpu.MemorySpace.VMEM),
    )(y_t)
    return out[0]


def loss_forward(y, target):
    """Mirror of Loss.forward.

    y:      (128, 10) float predictions
    target: (128,) int class labels (unused: the reference's scatter line is
            a no-op annotation, so one_hot stays all-zeros)
    Returns (1, loss): the reference returns the Python constant 1 and
    discards the computed pairwise distance; we also expose the distance for
    verification.
    """
    loss = pairwise_distance_pallas(y)  # (128,), computed on-TPU
    # TODO(synk): reference forward discards `loss` and returns the int 1;
    # we preserve that exact semantic (loss returned only for testing).
    return 1, loss


if __name__ == "__main__":
    key = jax.random.PRNGKey(0)
    ky, kt = jax.random.split(key)
    # Shapes implied by the module: y is (128, 10), target is (128,) labels.
    y = jax.random.normal(ky, (N_ROWS, N_COLS), dtype=jnp.float32)
    target = jax.random.randint(kt, (N_ROWS,), 0, N_COLS, dtype=jnp.int32)

    result, loss = loss_forward(y, target)
    loss = jax.block_until_ready(loss)

    # Plain-JAX reference of F.pairwise_distance(y, zeros): ||y + eps||_2.
    ref = jnp.sqrt(jnp.sum((y + _EPS) ** 2, axis=-1))
    assert loss.shape == (N_ROWS,)
    assert result == 1
    assert jnp.allclose(loss, ref, rtol=1e-5, atol=1e-5)

    print("KERNEL_OK")
</pallas_src>

<mosaic_0001>
module attributes {stable_mosaic.version = 11 : i64} {
  func.func @_pairwise_distance_kernel(%arg0: memref<10x128xf32, #tpu.memory_space<vmem>>, %arg1: memref<1x128xf32, #tpu.memory_space<vmem>>) attributes {dimension_semantics = [], scalar_prefetch = 0 : i64, scratch_operands = 0 : i64, tpu.core_type = #tpu.core_type<tc>} {
    %c0 = arith.constant 0 : index
    %c0_0 = arith.constant 0 : index
    %0 = vector.load %arg0[%c0, %c0_0] : memref<10x128xf32, #tpu.memory_space<vmem>>, vector<1x128xf32>
    %cst = arith.constant 9.99999997E-7 : f32
    %1 = vector.broadcast %cst : f32 to vector<1x128xf32>
    %2 = arith.addf %0, %1 : vector<1x128xf32>
    %3 = arith.mulf %2, %2 : vector<1x128xf32>
    %c1 = arith.constant 1 : index
    %c0_1 = arith.constant 0 : index
    %4 = vector.load %arg0[%c1, %c0_1] : memref<10x128xf32, #tpu.memory_space<vmem>>, vector<1x128xf32>
    %cst_2 = arith.constant 9.99999997E-7 : f32
    %5 = vector.broadcast %cst_2 : f32 to vector<1x128xf32>
    %6 = arith.addf %4, %5 : vector<1x128xf32>
    %7 = arith.mulf %6, %6 : vector<1x128xf32>
    %8 = arith.addf %3, %7 : vector<1x128xf32>
    %c2 = arith.constant 2 : index
    %c0_3 = arith.constant 0 : index
    %9 = vector.load %arg0[%c2, %c0_3] : memref<10x128xf32, #tpu.memory_space<vmem>>, vector<1x128xf32>
    %cst_4 = arith.constant 9.99999997E-7 : f32
    %10 = vector.broadcast %cst_4 : f32 to vector<1x128xf32>
    %11 = arith.addf %9, %10 : vector<1x128xf32>
    %12 = arith.mulf %11, %11 : vector<1x128xf32>
    %13 = arith.addf %8, %12 : vector<1x128xf32>
    %c3 = arith.constant 3 : index
    %c0_5 = arith.constant 0 : index
    %14 = vector.load %arg0[%c3, %c0_5] : memref<10x128xf32, #tpu.memory_space<vmem>>, vector<1x128xf32>
    %cst_6 = arith.constant 9.99999997E-7 : f32
    %15 = vector.broadcast %cst_6 : f32 to vector<1x128xf32>
    %16 = arith.addf %14, %15 : vector<1x128xf32>
    %17 = arith.mulf %16, %16 : vector<1x128xf32>
    %18 = arith.addf %13, %17 : vector<1x128xf32>
    %c4 = arith.constant 4 : index
    %c0_7 = arith.constant 0 : index
    %19 = vector.load %arg0[%c4, %c0_7] : memref<10x128xf32, #tpu.memory_space<vmem>>, vector<1x128xf32>
    %cst_8 = arith.constant 9.99999997E-7 : f32
    %20 = vector.broadcast %cst_8 : f32 to vector<1x128xf32>
    %21 = arith.addf %19, %20 : vector<1x128xf32>
    %22 = arith.mulf %21, %21 : vector<1x128xf32>
    %23 = arith.addf %18, %22 : vector<1x128xf32>
    %c5 = arith.constant 5 : index
    %c0_9 = arith.constant 0 : index
    %24 = vector.load %arg0[%c5, %c0_9] : memref<10x128xf32, #tpu.memory_space<vmem>>, vector<1x128xf32>
    %cst_10 = arith.constant 9.99999997E-7 : f32
    %25 = vector.broadcast %cst_10 : f32 to vector<1x128xf32>
    %26 = arith.addf %24, %25 : vector<1x128xf32>
    %27 = arith.mulf %26, %26 : vector<1x128xf32>
    %28 = arith.addf %23, %27 : vector<1x128xf32>
    %c6 = arith.constant 6 : index
    %c0_11 = arith.constant 0 : index
    %29 = vector.load %arg0[%c6, %c0_11] : memref<10x128xf32, #tpu.memory_space<vmem>>, vector<1x128xf32>
    %cst_12 = arith.constant 9.99999997E-7 : f32
    %30 = vector.broadcast %cst_12 : f32 to vector<1x128xf32>
    %31 = arith.addf %29, %30 : vector<1x128xf32>
    %32 = arith.mulf %31, %31 : vector<1x128xf32>
    %33 = arith.addf %28, %32 : vector<1x128xf32>
    %c7 = arith.constant 7 : index
    %c0_13 = arith.constant 0 : index
    %34 = vector.load %arg0[%c7, %c0_13] : memref<10x128xf32, #tpu.memory_space<vmem>>, vector<1x128xf32>
    %cst_14 = arith.constant 9.99999997E-7 : f32
    %35 = vector.broadcast %cst_14 : f32 to vector<1x128xf32>
    %36 = arith.addf %34, %35 : vector<1x128xf32>
    %37 = arith.mulf %36, %36 : vector<1x128xf32>
    %38 = arith.addf %33, %37 : vector<1x128xf32>
    %c8 = arith.constant 8 : index
    %c0_15 = arith.constant 0 : index
    %39 = vector.load %arg0[%c8, %c0_15] : memref<10x128xf32, #tpu.memory_space<vmem>>, vector<1x128xf32>
    %cst_16 = arith.constant 9.99999997E-7 : f32
    %40 = vector.broadcast %cst_16 : f32 to vector<1x128xf32>
    %41 = arith.addf %39, %40 : vector<1x128xf32>
    %42 = arith.mulf %41, %41 : vector<1x128xf32>
    %43 = arith.addf %38, %42 : vector<1x128xf32>
    %c9 = arith.constant 9 : index
    %c0_17 = arith.constant 0 : index
    %44 = vector.load %arg0[%c9, %c0_17] : memref<10x128xf32, #tpu.memory_space<vmem>>, vector<1x128xf32>
    %cst_18 = arith.constant 9.99999997E-7 : f32
    %45 = vector.broadcast %cst_18 : f32 to vector<1x128xf32>
    %46 = arith.addf %44, %45 : vector<1x128xf32>
    %47 = arith.mulf %46, %46 : vector<1x128xf32>
    %48 = arith.addf %43, %47 : vector<1x128xf32>
    %49 = math.sqrt %48 : vector<1x128xf32>
    %c0_19 = arith.constant 0 : index
    %c0_20 = arith.constant 0 : index
    %50 = vector.load %arg1[%c0_19, %c0_20] : memref<1x128xf32, #tpu.memory_space<vmem>>, vector<1x128xf32>
    tpu.vector_store %arg1[%c0_19, %c0_20], %49 {strides = array<i32>} : memref<1x128xf32, #tpu.memory_space<vmem>>, vector<1x128xf32>,
    return
  }
}

</mosaic_0001>

<bundles_post_ra>
// kernel: pairwise_distance_pallas.1
= control target key start
LH: loop header
LB: loop body
LE: loop exit
PB: predicated region body
PF: predicated region fallthrough
CT: control target
= control target key end

     0   :  { %6 = vsyncpa [#allocation3], 0  ;;  %s155_s0 = inlined_call_operand.hbm [shape: f32[10,128], index: 0, kind: input, shape index: {}]   ;;  %s156_s1 = inlined_call_operand.hbm [shape: f32[1,128], index: 1, kind: output, shape index: {}]  }
   0x1   :  { %7 = vsyncpa [#allocation4], 0  ;;  %s135_s6 = smov [#allocation2]  }
   0x2   :  { %s13_s7 = sshll.u32 %s135_s6, 4  ;;  %s14_s7 = int_to_ptr.vmem [resolvable:$true] %s13_s7 }
   0x3   :  { %s99_s8 = scalar_lea.vmem %s14_s7, 256  ;;  %p104_p1 = scmp.lt.s32.totalorder %s14_s7, %s14_s7 }
   0x4   :  { %p100_p0 = scmp.ne.s32.totalorder %s14_s7, %s99_s8  ;;  %p105_p2 = scmp.lt.s32.totalorder %s99_s8, %s99_s8 }
   0x6   :  { %p106_p3 = por %p105_p2, %p104_p1 }
   0x8   :  { %p107_p4 = pnand %p106_p3, %p100_p0 }
   0xa   :  { %110 = shalt.err (!%p107_p4)
}
   0xb   :  { %s136_s9 = smov 128   ;;  %s137_s10 = smov 8  }
   0xc   :  { %19 = dma.hbm_to_vmem [thread:$0]  %s155_s0, 256, %s14_s7, [#allocation3], %s136_s9, %s136_s9, %s137_s10  }
   0xd   :  { %131 = dma.done.wait [#allocation3], 256  }
   0xe   :  { %132 = vsyncadd [#allocation3], 4294967040  ;;  %v23_v0 = vld [vmem:[#allocation2] sm:$0x1]  ;;  %v26_v1 = vld [vmem:[#allocation2 + $0x1] sm:$0x1] }
   0xf   :  { %v30_v2 = vld [vmem:[#allocation2 + $0x2] sm:$0x1]  ;;  %v24_v3 = vadd.f32 1e-06, %v23_v0  ;;  %v27_v4 = vadd.f32 1e-06, %v26_v1 }
  0x10   :  { %v31_v5 = vadd.f32 1e-06, %v30_v2  ;;  %v34_v6 = vld [vmem:[#allocation2 + $0x3] sm:$0x1]  ;;  %v38_v7 = vld [vmem:[#allocation2 + $0x4] sm:$0x1] }
  0x11   :  { %v42_v8 = vld [vmem:[#allocation2 + $0x5] sm:$0x1]  ;;  %v25_v9 = vmul.f32 %v24_v3, %v24_v3  ;;  %v28_v10 = vmul.f32 %v27_v4, %v27_v4  ;;  %v35_v12 = vadd.f32 1e-06, %v34_v6  ;;  %v39_v13 = vadd.f32 1e-06, %v38_v7 }
  0x12   :  { %v32_v11 = vmul.f32 %v31_v5, %v31_v5  ;;  %v46_v14 = vld [vmem:[#allocation2 + $0x6] sm:$0x1]  ;;  %v43_v17 = vadd.f32 1e-06, %v42_v8  ;;  %v50_v18 = vld [vmem:[#allocation2 + $0x7] sm:$0x1] }
  0x13   :  { %v29_v15 = vadd.f32 %v28_v10, %v25_v9  ;;  %v36_v16 = vmul.f32 %v35_v12, %v35_v12  ;;  %v40_v20 = vmul.f32 %v39_v13, %v39_v13  ;;  %v47_v21 = vadd.f32 1e-06, %v46_v14  ;;  %v54_v22 = vld [vmem:[#allocation2 + $0x8] sm:$0x1]  ;;  %v58_v26 = vld [vmem:[#allocation2 + $0x9] sm:$0x1] }
  0x14   :  { %v44_v24 = vmul.f32 %v43_v17, %v43_v17  ;;  %v51_v25 = vadd.f32 1e-06, %v50_v18  ;;  %v55_v29 = vadd.f32 1e-06, %v54_v22  ;;  %v59_v32 = vadd.f32 1e-06, %v58_v26 }
  0x15   :  { %v33_v19 = vadd.f32 %v32_v11, %v29_v15  ;;  %v48_v28 = vmul.f32 %v47_v21, %v47_v21  ;;  %s138_s0 = smov [#allocation5]  }
  0x16   :  { %v52_v31 = vmul.f32 %v51_v25, %v51_v25  ;;  %v56_v34 = vmul.f32 %v55_v29, %v55_v29  ;;  %v60_v36 = vmul.f32 %v59_v32, %v59_v32  ;;  %s76_s13 = sshll.u32 %s138_s0, 4  ;;  %s77_s13 = int_to_ptr.vmem [resolvable:$true] %s76_s13 }
  0x17   :  { %v37_v23 = vadd.f32 %v36_v16, %v33_v19  ;;  %s111_s14 = scalar_lea.vmem %s77_s13, 16  ;;  %s115_s15 = scalar_lea.vmem %s77_s13, 32 }
  0x18   :  { %p112_p5 = scmp.ne.s32.totalorder %s77_s13, %s111_s14  ;;  %p116_p6 = scmp.lt.s32.totalorder %s77_s13, %s77_s13 }
  0x19   :  { %v41_v27 = vadd.f32 %v40_v20, %v37_v23  ;;  %p117_p7 = scmp.lt.s32.totalorder %s115_s15, %s111_s14 }
  0x1b   :  { %v45_v30 = vadd.f32 %v44_v24, %v41_v27  ;;  %p118_p8 = por %p117_p7, %p116_p6 }
  0x1d   :  { %v49_v33 = vadd.f32 %v48_v28, %v45_v30  ;;  %p119_p9 = pnand %p118_p8, %p112_p5 }
  0x1f   :  { %v53_v35 = vadd.f32 %v52_v31, %v49_v33 }
  0x21   :  { %v57_v37 = vadd.f32 %v56_v34, %v53_v35 }
  0x23   :  { %v61_v38 = vadd.f32 %v60_v36, %v57_v37 }
  0x25   :  { %89 = vrsqrt.f32 %v61_v38  ;;  %vm64_vm0 = vcmp.eq.f32.partialorder %v61_v38, inf  ;;  %v67_v40 = vand.u32 2147483648, %v61_v38  ;;  %vm66_vm1 = vcmp.eq.f32.partialorder %v61_v38, 0.0 }
  0x32   :  { %v90_v39 = vpop.eup %89 }
  0x33   :  { %v63_v41 = vmul.f32 %v90_v39, %v61_v38 }
  0x35   :  { %v65_v42 = vsel %vm64_vm0, %v61_v38, %v63_v41 }
  0x36   :  { %v68_v43 = vsel %vm66_vm1, %v67_v40, %v65_v42 }
  0x37   :  { %69 = vst [vmem:[#allocation5] sm:$0x1] %v68_v43 }
  0x38   :  { %122 = shalt.err (!%p119_p9)
}
  0x39   :  { %79 = dma.vmem_to_hbm [thread:$0]  %s77_s13, 16, %s156_s1, [#allocation4]  }
  0x3a   :  { %133 = dma.done.wait [#allocation4], 16  }
  0x3b   :  { %134 = vsyncadd [#allocation4], 4294967280 }
  0x3c   :  { %83 = vsyncpa [#allocation3], 1 }
  0x3d   :  { %84 = vsyncpa [#allocation4], 1 }

</bundles_post_ra>
